<compile_context>
chip_gen: v6e
topology: v6e:2x2x1
jax: 0.10.0
libtpu: 0.0.40
codegen_flags: <defaults>
</compile_context>

<pallas_src>
import jax
import jax.numpy as jnp
from jax.experimental import pallas as pl
from jax.experimental.pallas import tpu as pltpu

LANE = 128
# Numerical guard; PyTorch's _neg_loss calls log() unclipped (gives +/-inf at
# pred == 0/1).  Intentional, documented deviation for finite losses.
EPS = 1e-6


def _tpu_config():
    """(row_tile, n_cores, leading_dim_semantics, vmem_limit_bytes) per generation."""
    try:
        kind = jax.devices()[0].device_kind.lower()
    except Exception:
        kind = ""
    if "v7" in kind or "tpu7" in kind:
        # v7x: 2 TensorCores, ~3.2 TB/s HBM, 64 MiB VMEM/TC -> big tiles + explicit
        # 2-way core split of the reduction.
        return 4096, 2, pltpu.CORE_PARALLEL, 48 * 1024 * 1024
    if "v4" in kind or "v5" in kind or "v6" in kind:
        # 1 TensorCore per JAX device, 128 MiB physical VMEM -> 2048-row tiles with
        # a raised scoped-VMEM limit (elementwise intermediates + double buffers).
        return 2048, 1, pltpu.PARALLEL, 96 * 1024 * 1024
    # Unknown chip: previously-validated conservative configuration.
    return 1024, 1, pltpu.PARALLEL, None


def object_heatmap_loss(pred, target, *, tm=None):
    """Scalar CenterNet focal loss over (B, C, H, W) heatmaps (probabilities)."""
    assert pred.shape == target.shape
    assert pred.size > 0

    tm_default, ncores, lead_sem, vmem_limit = _tpu_config()
    if tm is None:
        tm = tm_default

    # Flatten to a lane-dense (rows, 128) view in the NATIVE dtype.  Both reshapes
    # are layout-preserving bitcasts (no HBM copy) when numel % 128 == 0.
    pred_f = pred.reshape(-1)
    tgt_f = target.reshape(-1)
    n = pred_f.shape[0]                      # true element count (used by the mask)
    n128 = -(-n // LANE) * LANE
    if n128 != n:
        # Rare sub-row remainder (<128 elems).  The padded elements are excluded
        # exactly by the in-kernel tail mask.
        pred_f = jnp.pad(pred_f, (0, n128 - n))
        tgt_f = jnp.pad(tgt_f, (0, n128 - n))
    m = n128 // LANE

    # Sublane granularity of the packed native dtype: f32 -> 8, bf16 -> 16, int8 -> 32.
    min_isz = min(pred_f.dtype.itemsize, tgt_f.dtype.itemsize, 4)
    sub = 8 * max(1, 4 // max(1, min_isz))
    tm = max(sub, min(int(tm), -(-m // sub) * sub))
    tm = -(-tm // sub) * sub

    total_blocks = -(-m // tm)               # real row-blocks
    steps = -(-total_blocks // ncores)       # inner (reduction) grid extent
    last_block = total_blocks - 1
    blk_elems = tm * LANE

    pred2 = pred_f.reshape(m, LANE)
    tgt2 = tgt_f.reshape(m, LANE)

    def _partial(v):
        """(tm, 128) f32 -> (8, 128) partial sum via 4 independent add chains."""
        r = v.shape[0]
        vr = v.reshape(r // 8, 8, LANE)
        g = vr.shape[0]
        if g >= 8 and g % 4 == 0:
            q = g // 4
            p = [jnp.sum(vr[j * q:(j + 1) * q], axis=0) for j in range(4)]
            return (p[0] + p[1]) + (p[2] + p[3])
        return jnp.sum(vr, axis=0)

    def _tile_terms(pred_raw, tgt_raw):
        p = jnp.clip(pred_raw.astype(jnp.float32), EPS, 1.0 - EPS)
        t = tgt_raw.astype(jnp.float32)
        pos = t == 1.0
        one_m_p = 1.0 - p
        # Single EUP transcendental per element: log(p) on pos, log(1-p) on neg.
        logx = jnp.log(jnp.where(pos, p, one_m_p))
        w_pos = jnp.square(one_m_p)                              # (1 - p)^2
        w_neg = jnp.square(p) * jnp.square(jnp.square(1.0 - t))  # p^2 (1 - t)^4
        # Fused channel: pos_loss + neg_loss.  Safe for the num_pos == 0 branch
        # because pos_loss is exactly 0 when there are no positives.
        term = logx * jnp.where(pos, w_pos, w_neg)
        cnt = jnp.where(pos, 1.0, 0.0)
        return term, cnt

    def kernel(pred_ref, tgt_ref, acc_ref):
        c = pl.program_id(0)
        i = pl.program_id(1)

        @pl.when(i == 0)
        def _init():
            acc_ref[...] = jnp.zeros_like(acc_ref)

        term, cnt = _tile_terms(pred_ref[...], tgt_ref[...])

        rb = c * steps + i                        # un-clamped logical row-block index
        blk_start = rb * blk_elems
        needs_mask = blk_start + blk_elems > n    # only tail / overflow blocks

        @pl.when(jnp.logical_not(needs_mask))
        def _interior():
            acc_ref[0, 0, :, :] += _partial(term)
            acc_ref[0, 1, :, :] += _partial(cnt)

        @pl.when(needs_mask)
        def _tail():
            # Mask out-of-range elements (garbage / padding) BEFORE accumulation.
            # jnp.where is a select, so NaN/Inf from garbage data cannot leak.
            rows = jax.lax.broadcasted_iota(jnp.int32, (tm, LANE), 0)
            lanes = jax.lax.broadcasted_iota(jnp.int32, (tm, LANE), 1)
            valid = (blk_start + rows * LANE + lanes) < n
            zero = jnp.zeros_like(term)
            acc_ref[0, 0, :, :] += _partial(jnp.where(valid, term, zero))
            acc_ref[0, 1, :, :] += _partial(jnp.where(valid, cnt, zero))

    # Clamp the block index so an overflow block (odd block count on 2 cores) never
    # starts a DMA past the array; its contribution is zeroed by the tail mask.
    in_map = lambda c, i: (jnp.minimum(c * steps + i, last_block), 0)

    compiler_kwargs = dict(dimension_semantics=(lead_sem, pltpu.ARBITRARY))
    if vmem_limit is not None:
        compiler_kwargs["vmem_limit_bytes"] = vmem_limit

    acc = pl.pallas_call(
        kernel,
        out_shape=jax.ShapeDtypeStruct((ncores, 2, 8, LANE), jnp.float32),
        grid_spec=pltpu.PrefetchScalarGridSpec(
            num_scalar_prefetch=0,
            grid=(ncores, steps),
            in_specs=[
                pl.BlockSpec((tm, LANE), in_map),
                pl.BlockSpec((tm, LANE), in_map),
            ],
            out_specs=pl.BlockSpec((1, 2, 8, LANE), lambda c, i: (c, 0, 0, 0)),
        ),
        compiler_params=pltpu.CompilerParams(**compiler_kwargs),
    )(pred2, tgt2)

    sums = jnp.sum(acc, axis=(0, 2, 3))      # tiny (2,) tree-reduce in XLA
    total, num_pos = sums[0], sums[1]
    # CenterNet branch: num_pos == 0 -> loss = -neg_loss (== -total, since the
    # positive contribution is exactly zero in that case).
    return jnp.where(num_pos > 0.0, -total / jnp.maximum(num_pos, 1.0), -total)


def _reference_loss(pred, target):
    """Pure-JAX reference (same clipping; only summation order differs)."""
    p = jnp.clip(pred.astype(jnp.float32), EPS, 1.0 - EPS)
    t = target.astype(jnp.float32)
    pos = t == 1.0
    logx = jnp.log(jnp.where(pos, p, 1.0 - p))
    w_pos = jnp.square(1.0 - p)
    w_neg = jnp.square(p) * jnp.square(jnp.square(1.0 - t))
    pos_loss = jnp.sum(jnp.where(pos, logx * w_pos, 0.0))
    neg_loss = jnp.sum(jnp.where(pos, 0.0, logx * w_neg))
    num_pos = jnp.sum(pos.astype(jnp.float32))
    return jnp.where(
        num_pos > 0.0,
        -(pos_loss + neg_loss) / jnp.maximum(num_pos, 1.0),
        -neg_loss,
    )


if __name__ == "__main__":
    key = jax.random.PRNGKey(0)
    k1, k2, k3 = jax.random.split(key, 3)

    loss_fn = jax.jit(object_heatmap_loss, static_argnames=("tm",))

    # ---- main check: f32 heatmaps, NCHW conv-output layout ----------------------
    B, C, H, W = 2, 4, 16, 16
    pred = jax.nn.sigmoid(jax.random.normal(k1, (B, C, H, W), dtype=jnp.float32))
    target = jax.random.uniform(k2, (B, C, H, W), dtype=jnp.float32) ** 3
    peak = jax.random.uniform(k3, (B, C, H, W)) > 0.98
    target = jnp.where(peak, 1.0, target)

    loss = jax.block_until_ready(loss_fn(pred, target))
    ref = jax.block_until_ready(_reference_loss(pred, target))
    assert jnp.allclose(loss, ref, rtol=1e-4, atol=1e-4), (loss, ref)

    # ---- native-dtype (bf16) streaming path: kernel upcasts in VMEM -------------
    pred_bf, tgt_bf = pred.astype(jnp.bfloat16), target.astype(jnp.bfloat16)
    loss_bf = jax.block_until_ready(loss_fn(pred_bf, tgt_bf))
    ref_bf = jax.block_until_ready(_reference_loss(pred_bf, tgt_bf))
    assert jnp.allclose(loss_bf, ref_bf, rtol=5e-3, atol=5e-3), (loss_bf, ref_bf)

    # ---- tail-mask path: rows not a multiple of the row tile, multi-step grid ---
    B2, C2, H2, W2 = 2, 3, 24, 24            # 3456 elems = 27 rows of 128
    pred2 = jax.nn.sigmoid(jax.random.normal(k1, (B2, C2, H2, W2), dtype=jnp.float32))
    target2 = jax.random.uniform(k2, (B2, C2, H2, W2), dtype=jnp.float32) ** 3
    peak2 = jax.random.uniform(k3, (B2, C2, H2, W2)) > 0.98
    target2 = jnp.where(peak2, 1.0, target2)
    loss2 = jax.block_until_ready(loss_fn(pred2, target2, tm=8))
    ref2 = jax.block_until_ready(_reference_loss(pred2, target2))
    assert jnp.allclose(loss2, ref2, rtol=1e-4, atol=1e-4), (loss2, ref2)

    print("KERNEL_OK")
</pallas_src>

<mosaic_0001>
module attributes {stable_mosaic.version = 11 : i64} {
  func.func @kernel(%arg0: i32, %arg1: i32, %arg2: memref<16x128xf32, #tpu.memory_space<vmem>>, %arg3: memref<16x128xf32, #tpu.memory_space<vmem>>, %arg4: memref<1x2x8x128xf32, #tpu.memory_space<vmem>>) attributes {dimension_semantics = [#tpu.dimension_semantics<parallel>, #tpu.dimension_semantics<arbitrary>], iteration_bounds = array<i64: 1, 1>, scalar_prefetch = 0 : i64, scratch_operands = 0 : i64, tpu.core_type = #tpu.core_type<tc>, window_params = [{transform_indices = @transform_0, window_bounds = array<i64: 16, 128>}, {transform_indices = @transform_1, window_bounds = array<i64: 16, 128>}, {transform_indices = @transform_2, window_bounds = array<i64: 1, 2, 8, 128>}]} {
    %c0_i32 = arith.constant 0 : i32
    %0 = arith.cmpi eq, %arg1, %c0_i32 : i32
    %1 = arith.extui %0 : i1 to i32
    %c0_i32_0 = arith.constant 0 : i32
    %2 = arith.cmpi ne, %1, %c0_i32_0 : i32
    scf.if %2 {
      %cst_14 = arith.constant 0.000000e+00 : f32
      %37 = vector.broadcast %cst_14 : f32 to vector<1x2x8x128xf32>
      %c0_15 = arith.constant 0 : index
      %c0_16 = arith.constant 0 : index
      %c0_17 = arith.constant 0 : index
      %c0_18 = arith.constant 0 : index
      %38 = vector.load %arg4[%c0_15, %c0_16, %c0_17, %c0_18] : memref<1x2x8x128xf32, #tpu.memory_space<vmem>>, vector<1x2x8x128xf32>
      tpu.vector_store %arg4[%c0_15, %c0_16, %c0_17, %c0_18], %37 {strides = array<i32>} : memref<1x2x8x128xf32, #tpu.memory_space<vmem>>, vector<1x2x8x128xf32>,
    } else {
    }
    %c0 = arith.constant 0 : index
    %c0_1 = arith.constant 0 : index
    %3 = vector.load %arg2[%c0, %c0_1] : memref<16x128xf32, #tpu.memory_space<vmem>>, vector<16x128xf32>
    %c0_2 = arith.constant 0 : index
    %c0_3 = arith.constant 0 : index
    %4 = vector.load %arg3[%c0_2, %c0_3] : memref<16x128xf32, #tpu.memory_space<vmem>>, vector<16x128xf32>
    %cst = arith.constant 9.99999997E-7 : f32
    %cst_4 = arith.constant 0.999998986 : f32
    %5 = vector.broadcast %cst : f32 to vector<16x128xf32>
    %6 = arith.maximumf %5, %3 : vector<16x128xf32>
    %7 = vector.broadcast %cst_4 : f32 to vector<16x128xf32>
    %8 = arith.minimumf %7, %6 : vector<16x128xf32>
    %cst_5 = arith.constant 1.000000e+00 : f32
    %9 = vector.broadcast %cst_5 : f32 to vector<16x128xf32>
    %10 = arith.cmpf oeq, %4, %9 : vector<16x128xf32>
    %cst_6 = arith.constant 1.000000e+00 : f32
    %11 = vector.broadcast %cst_6 : f32 to vector<16x128xf32>
    %12 = arith.subf %11, %8 : vector<16x128xf32>
    %13 = arith.select %10, %8, %12 : vector<16x128xi1>, vector<16x128xf32>
    %14 = math.log %13 : vector<16x128xf32>
    %15 = arith.mulf %12, %12 : vector<16x128xf32>
    %16 = arith.mulf %8, %8 : vector<16x128xf32>
    %cst_7 = arith.constant 1.000000e+00 : f32
    %17 = vector.broadcast %cst_7 : f32 to vector<16x128xf32>
    %18 = arith.subf %17, %4 : vector<16x128xf32>
    %19 = arith.mulf %18, %18 : vector<16x128xf32>
    %20 = arith.mulf %19, %19 : vector<16x128xf32>
    %21 = arith.mulf %16, %20 : vector<16x128xf32>
    %22 = arith.select %10, %15, %21 : vector<16x128xi1>, vector<16x128xf32>
    %23 = arith.mulf %14, %22 : vector<16x128xf32>
    %cst_8 = arith.constant 1.000000e+00 : f32
    %cst_9 = arith.constant 0.000000e+00 : f32
    %24 = vector.broadcast %cst_8 : f32 to vector<16x128xf32>
    %25 = vector.broadcast %cst_9 : f32 to vector<16x128xf32>
    %26 = arith.select %10, %24, %25 : vector<16x128xi1>, vector<16x128xf32>
    %c1_i32 = arith.constant 1 : i32
    %27 = arith.muli %arg0, %c1_i32 : i32
    %28 = arith.addi %27, %arg1 : i32
    %c2048_i32 = arith.constant 2048 : i32
    %29 = arith.muli %28, %c2048_i32 : i32
    %c2048_i32_10 = arith.constant 2048 : i32
    %30 = arith.addi %29, %c2048_i32_10 : i32
    %c2048_i32_11 = arith.constant 2048 : i32
    %31 = arith.cmpi sgt, %30, %c2048_i32_11 : i32
    %true = arith.constant true
    %32 = arith.xori %31, %true : i1
    %33 = arith.extui %32 : i1 to i32
    %c0_i32_12 = arith.constant 0 : i32
    %34 = arith.cmpi ne, %33, %c0_i32_12 : i32
    scf.if %34 {
      %c0_14 = arith.constant 0 : index
      %c0_15 = arith.constant 0 : index
      %c0_16 = arith.constant 0 : index
      %c0_17 = arith.constant 0 : index
      %37 = vector.load %arg4[%c0_14, %c0_15, %c0_16, %c0_17] : memref<1x2x8x128xf32, #tpu.memory_space<vmem>>, vector<1x1x8x128xf32>
      %38 = vector.shape_cast %37 : vector<1x1x8x128xf32> to vector<8x128xf32>
      %39 = vector.shape_cast %23 : vector<16x128xf32> to vector<2x8x128xf32>
      %cst_18 = arith.constant dense<0.000000e+00> : vector<8x128xf32>
      %40 = vector.multi_reduction <add>, %39, %cst_18 [0] : vector<2x8x128xf32> to vector<8x128xf32>
      %41 = arith.addf %38, %40 : vector<8x128xf32>
      %c0_19 = arith.constant 0 : index
      %c0_20 = arith.constant 0 : index
      %c0_21 = arith.constant 0 : index
      %c0_22 = arith.constant 0 : index
      %42 = vector.load %arg4[%c0_19, %c0_20, %c0_21, %c0_22] : memref<1x2x8x128xf32, #tpu.memory_space<vmem>>, vector<1x1x8x128xf32>
      %43 = vector.shape_cast %42 : vector<1x1x8x128xf32> to vector<8x128xf32>
      %44 = vector.shape_cast %41 : vector<8x128xf32> to vector<1x1x8x128xf32>
      tpu.vector_store %arg4[%c0_19, %c0_20, %c0_21, %c0_22], %44 {strides = array<i32>} : memref<1x2x8x128xf32, #tpu.memory_space<vmem>>, vector<1x1x8x128xf32>,
      %c0_23 = arith.constant 0 : index
      %c1 = arith.constant 1 : index
      %c0_24 = arith.constant 0 : index
      %c0_25 = arith.constant 0 : index
      %45 = vector.load %arg4[%c0_23, %c1, %c0_24, %c0_25] : memref<1x2x8x128xf32, #tpu.memory_space<vmem>>, vector<1x1x8x128xf32>
      %46 = vector.shape_cast %45 : vector<1x1x8x128xf32> to vector<8x128xf32>
      %47 = vector.shape_cast %26 : vector<16x128xf32> to vector<2x8x128xf32>
      %cst_26 = arith.constant dense<0.000000e+00> : vector<8x128xf32>
      %48 = vector.multi_reduction <add>, %47, %cst_26 [0] : vector<2x8x128xf32> to vector<8x128xf32>
      %49 = arith.addf %46, %48 : vector<8x128xf32>
      %c0_27 = arith.constant 0 : index
      %c1_28 = arith.constant 1 : index
      %c0_29 = arith.constant 0 : index
      %c0_30 = arith.constant 0 : index
      %50 = vector.load %arg4[%c0_27, %c1_28, %c0_29, %c0_30] : memref<1x2x8x128xf32, #tpu.memory_space<vmem>>, vector<1x1x8x128xf32>
      %51 = vector.shape_cast %50 : vector<1x1x8x128xf32> to vector<8x128xf32>
      %52 = vector.shape_cast %49 : vector<8x128xf32> to vector<1x1x8x128xf32>
      tpu.vector_store %arg4[%c0_27, %c1_28, %c0_29, %c0_30], %52 {strides = array<i32>} : memref<1x2x8x128xf32, #tpu.memory_space<vmem>>, vector<1x1x8x128xf32>,
    } else {
    }
    %35 = arith.extui %31 : i1 to i32
    %c0_i32_13 = arith.constant 0 : i32
    %36 = arith.cmpi ne, %35, %c0_i32_13 : i32
    scf.if %36 {
      %37 = tpu.iota {dimensions = array<i32: 0>} : vector<16x128xi32>
      %38 = tpu.iota {dimensions = array<i32: 1>} : vector<16x128xi32>
      %c128_i32 = arith.constant 128 : i32
      %39 = vector.broadcast %c128_i32 : i32 to vector<16x128xi32>
      %40 = arith.muli %37, %39 : vector<16x128xi32>
      %41 = vector.broadcast %29 : i32 to vector<16x128xi32>
      %42 = arith.addi %41, %40 : vector<16x128xi32>
      %43 = arith.addi %42, %38 : vector<16x128xi32>
      %c2048_i32_14 = arith.constant 2048 : i32
      %44 = vector.broadcast %c2048_i32_14 : i32 to vector<16x128xi32>
      %45 = arith.cmpi slt, %43, %44 : vector<16x128xi32>
      %cst_15 = arith.constant 0.000000e+00 : f32
      %46 = vector.broadcast %cst_15 : f32 to vector<16x128xf32>
      %c0_16 = arith.constant 0 : index
      %c0_17 = arith.constant 0 : index
      %c0_18 = arith.constant 0 : index
      %c0_19 = arith.constant 0 : index
      %47 = vector.load %arg4[%c0_16, %c0_17, %c0_18, %c0_19] : memref<1x2x8x128xf32, #tpu.memory_space<vmem>>, vector<1x1x8x128xf32>
      %48 = vector.shape_cast %47 : vector<1x1x8x128xf32> to vector<8x128xf32>
      %49 = arith.select %45, %23, %46 : vector<16x128xi1>, vector<16x128xf32>
      %50 = vector.shape_cast %49 : vector<16x128xf32> to vector<2x8x128xf32>
      %cst_20 = arith.constant dense<0.000000e+00> : vector<8x128xf32>
      %51 = vector.multi_reduction <add>, %50, %cst_20 [0] : vector<2x8x128xf32> to vector<8x128xf32>
      %52 = arith.addf %48, %51 : vector<8x128xf32>
      %c0_21 = arith.constant 0 : index
      %c0_22 = arith.constant 0 : index
      %c0_23 = arith.constant 0 : index
      %c0_24 = arith.constant 0 : index
      %53 = vector.load %arg4[%c0_21, %c0_22, %c0_23, %c0_24] : memref<1x2x8x128xf32, #tpu.memory_space<vmem>>, vector<1x1x8x128xf32>
      %54 = vector.shape_cast %53 : vector<1x1x8x128xf32> to vector<8x128xf32>
      %55 = vector.shape_cast %52 : vector<8x128xf32> to vector<1x1x8x128xf32>
      tpu.vector_store %arg4[%c0_21, %c0_22, %c0_23, %c0_24], %55 {strides = array<i32>} : memref<1x2x8x128xf32, #tpu.memory_space<vmem>>, vector<1x1x8x128xf32>,
      %c0_25 = arith.constant 0 : index
      %c1 = arith.constant 1 : index
      %c0_26 = arith.constant 0 : index
      %c0_27 = arith.constant 0 : index
      %56 = vector.load %arg4[%c0_25, %c1, %c0_26, %c0_27] : memref<1x2x8x128xf32, #tpu.memory_space<vmem>>, vector<1x1x8x128xf32>
      %57 = vector.shape_cast %56 : vector<1x1x8x128xf32> to vector<8x128xf32>
      %58 = arith.select %45, %26, %46 : vector<16x128xi1>, vector<16x128xf32>
      %59 = vector.shape_cast %58 : vector<16x128xf32> to vector<2x8x128xf32>
      %cst_28 = arith.constant dense<0.000000e+00> : vector<8x128xf32>
      %60 = vector.multi_reduction <add>, %59, %cst_28 [0] : vector<2x8x128xf32> to vector<8x128xf32>
      %61 = arith.addf %57, %60 : vector<8x128xf32>
      %c0_29 = arith.constant 0 : index
      %c1_30 = arith.constant 1 : index
      %c0_31 = arith.constant 0 : index
      %c0_32 = arith.constant 0 : index
      %62 = vector.load %arg4[%c0_29, %c1_30, %c0_31, %c0_32] : memref<1x2x8x128xf32, #tpu.memory_space<vmem>>, vector<1x1x8x128xf32>
      %63 = vector.shape_cast %62 : vector<1x1x8x128xf32> to vector<8x128xf32>
      %64 = vector.shape_cast %61 : vector<8x128xf32> to vector<1x1x8x128xf32>
      tpu.vector_store %arg4[%c0_29, %c1_30, %c0_31, %c0_32], %64 {strides = array<i32>} : memref<1x2x8x128xf32, #tpu.memory_space<vmem>>, vector<1x1x8x128xf32>,
    } else {
    }
    return
  }
  func.func @transform_0(%arg0: i32, %arg1: i32) -> (i32, i32) {
    %c1_i32 = arith.constant 1 : i32
    %0 = arith.muli %arg0, %c1_i32 : i32
    %1 = arith.addi %0, %arg1 : i32
    %c0_i32 = arith.constant 0 : i32
    %2 = arith.minsi %1, %c0_i32 : i32
    %c0_i32_0 = arith.constant 0 : i32
    %c0_i32_1 = arith.constant 0 : i32
    return %2, %c0_i32_0 : i32, i32
  }
  func.func @transform_1(%arg0: i32, %arg1: i32) -> (i32, i32) {
    %c1_i32 = arith.constant 1 : i32
    %0 = arith.muli %arg0, %c1_i32 : i32
    %1 = arith.addi %0, %arg1 : i32
    %c0_i32 = arith.constant 0 : i32
    %2 = arith.minsi %1, %c0_i32 : i32
    %c0_i32_0 = arith.constant 0 : i32
    %c0_i32_1 = arith.constant 0 : i32
    return %2, %c0_i32_0 : i32, i32
  }
  func.func @transform_2(%arg0: i32, %arg1: i32) -> (i32, i32, i32, i32) {
    %c0_i32 = arith.constant 0 : i32
    %c0_i32_0 = arith.constant 0 : i32
    %c0_i32_1 = arith.constant 0 : i32
    %c0_i32_2 = arith.constant 0 : i32
    return %arg0, %c0_i32, %c0_i32_0, %c0_i32_1 : i32, i32, i32, i32
  }
}

</mosaic_0001>

<bundles_post_ra>
// kernel: object_heatmap_loss.1
= control target key start
LH: loop header
LB: loop body
LE: loop exit
PB: predicated region body
PF: predicated region fallthrough
CT: control target
= control target key end

     0   :  { %v189_v6 = vmov 0.0   ;;  %s229_s0 = inlined_call_operand.vmem [shape: f32[16,128], index: 0, kind: input, shape index: {}]   ;;  %s230_s1 = inlined_call_operand.vmem [shape: f32[16,128], index: 1, kind: input, shape index: {}]   ;;  %s231_s2 = inlined_call_operand.vmem [shape: f32[1,2,8,128], index: 2, kind: output, shape index: {}]  }
   0x1   :  { %v81_v0 = vld [vmem:[%s229_s0] sm:$0xff]  ;;  %v82_v1 = vld [vmem:[%s229_s0 + $0x8] sm:$0xff] }
   0x2   :  { %v83_v2 = vld [vmem:[%s230_s1] sm:$0xff]  ;;  %v84_v3 = vld [vmem:[%s230_s1 + $0x8] sm:$0xff]  ;;  %v85_v4 = vmax.f32 %v81_v0, 1e-06  ;;  %v86_v5 = vmax.f32 %v82_v1, 1e-06 }
   0x3   :  { %vm89_vm0 = vcmp.eq.f32.partialorder %v83_v2, 1.0  ;;  %vm90_vm1 = vcmp.eq.f32.partialorder %v84_v3, 1.0  ;;  %v103_v14 = vsub.f32 1.0, %v83_v2  ;;  %v104_v15 = vsub.f32 1.0, %v84_v3 }
   0x4   :  { %v115_v7 = vsel %vm89_vm0, 1.0, %v189_v6  ;;  %v87_v8 = vmin.f32 %v85_v4, 0.999999  ;;  %v88_v9 = vmin.f32 %v86_v5, 0.999999  ;;  %v116_v10 = vsel %vm90_vm1, 1.0, %v189_v6 }
   0x5   :  { %v131_v11 = vadd.f32 %v116_v10, %v115_v7  ;;  %v105_v18 = vmul.f32 %v103_v14, %v103_v14  ;;  %v106_v19 = vmul.f32 %v104_v15, %v104_v15 }
   0x6   :  { %v91_v12 = vsub.f32 1.0, %v87_v8  ;;  %v92_v13 = vsub.f32 1.0, %v88_v9  ;;  %v101_v20 = vmul.f32 %v87_v8, %v87_v8  ;;  %v102_v22 = vmul.f32 %v88_v9, %v88_v9 }
   0x7   :  { %181 = vst [vmem:[%s231_s2 + $0x8] sm:$0xff] %v131_v11  ;;  %v107_v21 = vmul.f32 %v105_v18, %v105_v18  ;;  %v108_v23 = vmul.f32 %v106_v19, %v106_v19 }
   0x8   :  { %v93_v16 = vsel %vm89_vm0, %v87_v8, %v91_v12  ;;  %v94_v17 = vsel %vm90_vm1, %v88_v9, %v92_v13  ;;  %v99_v24 = vmul.f32 %v91_v12, %v91_v12  ;;  %v100_v26 = vmul.f32 %v92_v13, %v92_v13 }
   0x9   :  { %185 = vlog2.f32 %v93_v16  ;;  %v109_v25 = vmul.f32 %v107_v21, %v101_v20  ;;  %v110_v27 = vmul.f32 %v108_v23, %v102_v22 }
   0xa   :  { %187 = vlog2.f32 %v94_v17 }
   0xb   :  { %v111_v29 = vsel %vm89_vm0, %v99_v24, %v109_v25  ;;  %v112_v32 = vsel %vm90_vm1, %v100_v26, %v110_v27 }
  0x16   :  { %v186_v28 = vpop.eup %185 }
  0x17   :  { %v188_v30 = vpop.eup %187  ;;  %v96_v31 = vmul.f32 0.6931472, %v186_v28 }
  0x18   :  { %v98_v33 = vmul.f32 0.6931472, %v188_v30 }
  0x19   :  { %v113_v34 = vmul.f32 %v111_v29, %v96_v31 }
  0x1a   :  { %v114_v35 = vmul.f32 %v112_v32, %v98_v33 }
  0x1c   :  { %v126_v36 = vadd.f32 %v114_v35, %v113_v34 }
  0x1e   :  { %128 = vst [vmem:[%s231_s2] sm:$0xff] %v126_v36 }

</bundles_post_ra>
